<compile_context>
chip_gen: v6e
topology: v6e:2x2x1
jax: 0.10.0
libtpu: 0.0.40
codegen_flags: <defaults>
</compile_context>

<pallas_src>
import functools

import jax
import jax.numpy as jnp
from jax.experimental import pallas as pl
from jax.experimental.pallas import tpu as pltpu

N_FEATURES = 32
HIDDEN1 = 512
HIDDEN2 = 32
LANES = 128            # lane-dense width for the fc3 / output path
MAX_TILE_ROWS = 2048   # caps per-step f32 intermediates (h1 ~ 4 MiB at 2048 rows)


def mlp_kernel(x_ref, w1_ref, b1_ref, w2_ref, b2_ref, w3_ref, b3_ref, o_ref,
               *, tile_b, t, inv_t):
    # x_ref: (tile_b * T, F) f32 block -- T folded into the MXU M dimension.
    xb = x_ref[...].astype(jnp.bfloat16)        # in-kernel cast; no extra HBM pass

    # fc1 + ReLU   (MXU bf16 in, f32 accumulate; bias/ReLU in f32)
    h1 = jnp.dot(xb, w1_ref[...], preferred_element_type=jnp.float32) + b1_ref[...]
    h1 = jnp.maximum(h1, 0.0)
    # TODO(synk): nn.Dropout(p=0.6) is treated as identity (eval-mode
    # semantics); training-mode stochastic dropout is not replicated here.

    # fc2 + ReLU
    h2 = jnp.dot(h1.astype(jnp.bfloat16), w2_ref[...],
                 preferred_element_type=jnp.float32) + b2_ref[...]
    h2 = jnp.maximum(h2, 0.0)

    # fc3 (out_features=1): f32 MXU matmul against the column-replicated
    # (32, 128) weight -> lane-dense logits, every lane identical.  Kept f32
    # so fc3 adds no bf16 rounding on top of fc1/fc2.
    logits = jnp.dot(h2, w3_ref[...], preferred_element_type=jnp.float32)
    p = jax.nn.sigmoid(logits + b3_ref[0, 0])   # (tile_b*T, LANES)

    # Mean over T: grouped sublane reduce, single output write per batch tile.
    # (With T a multiple of 8 each (T, LANES) slab is exactly native tiles,
    # so the reshape is a layout no-op.)
    p3 = jnp.reshape(p, (tile_b, t, LANES))
    o_ref[...] = jnp.sum(p3, axis=1) * inv_t


def _pick_tile_b(batch, t):
    """Fewest, fattest batch tiles subject to a per-step row cap.

    Single-TC chips (v5e/v6e): one fat tile when B*T fits (grid of 1).
    Larger problems: largest 8-aligned divisor of B under the cap, which also
    yields >= 2 'parallel' tiles for v7x's two TensorCores.
    """
    if batch * t <= MAX_TILE_ROWS:
        return batch
    for cand in range(min(batch, MAX_TILE_ROWS // t), 7, -1):
        if batch % cand == 0 and cand % 8 == 0:
            return cand
    return batch  # fallback: one tile (block dims == full array dims)


@jax.jit
def model_v2_forward(x, params):
    """x: (B, T, F) float32 -> (B, 1) float32 (matches Model_V2.forward, eval mode)."""
    B, T, F = x.shape
    w1, b1, w2, b2, w3, b3 = params
    tile_b = _pick_tile_b(B, T)
    assert B % tile_b == 0

    # Native layout: per batch row, the T timesteps are contiguous, so the flat
    # (B*T, F) view tiles into (tile_b*T, F) blocks of whole batch rows.
    x2 = x.reshape(B * T, F)

    # fc3 weight replicated across 128 lanes (f32 for full precision, 16 KiB).
    w3_rep = jnp.broadcast_to(w3, (HIDDEN2, LANES))

    grid = (B // tile_b,)
    kernel = functools.partial(mlp_kernel, tile_b=tile_b, t=T, inv_t=1.0 / T)

    flops = 2 * B * T * (F * HIDDEN1 + HIDDEN1 * HIDDEN2 + HIDDEN2 * LANES)
    bytes_accessed = (
        B * T * F * 4                                   # x read once, f32
        + (F * HIDDEN1 + HIDDEN1 * HIDDEN2) * 2         # bf16 weights
        + (HIDDEN1 + HIDDEN2 + 1) * 4                   # f32 biases
        + HIDDEN2 * LANES * 4                           # replicated fc3 weight
        + B * LANES * 4                                 # lane-dense output
    )

    out = pl.pallas_call(
        kernel,
        out_shape=jax.ShapeDtypeStruct((B, LANES), jnp.float32),
        grid_spec=pltpu.PrefetchScalarGridSpec(
            num_scalar_prefetch=0,
            grid=grid,
            in_specs=[
                # x: (B*T, F) f32 -> (tile_b*T, F) block (tile_b whole batch rows)
                pl.BlockSpec((tile_b * T, F), lambda i: (i, 0)),
                # weights / biases: constant index_map -> resident in VMEM
                pl.BlockSpec((F, HIDDEN1), lambda i: (0, 0)),
                pl.BlockSpec((1, HIDDEN1), lambda i: (0, 0)),
                pl.BlockSpec((HIDDEN1, HIDDEN2), lambda i: (0, 0)),
                pl.BlockSpec((1, HIDDEN2), lambda i: (0, 0)),
                pl.BlockSpec((HIDDEN2, LANES), lambda i: (0, 0)),
                pl.BlockSpec((1, 1), lambda i: (0, 0)),
            ],
            out_specs=pl.BlockSpec((tile_b, LANES), lambda i: (i, 0)),
        ),
        compiler_params=pltpu.CompilerParams(
            dimension_semantics=("parallel",),
            vmem_limit_bytes=32 * 1024 * 1024,
        ),
        cost_estimate=pl.CostEstimate(
            flops=flops, transcendentals=B * T * LANES,
            bytes_accessed=bytes_accessed),
    )(x2, w1, b1, w2, b2, w3_rep, b3)

    # Every lane of a row holds the same per-batch mean; take column 0.
    return out[:, :1]


def xavier_uniform(key, out_f, in_f):
    # torch.nn.init.xavier_uniform_ (gain=1): U(-a, a), a = sqrt(6/(fan_in+fan_out))
    a = (6.0 / (in_f + out_f)) ** 0.5
    return jax.random.uniform(key, (out_f, in_f), jnp.float32, -a, a)


def init_params(key, n_features):
    k1, k2, k3 = jax.random.split(key, 3)
    # PyTorch Linear stores W as (out, in) and computes x @ W.T + b.
    # fc1/fc2 are pre-transposed to (in, out) and stored bf16 for the MXU;
    # fc3 stays an f32 (32, 1) column; biases zero (f32), as in weight_init.
    w1 = xavier_uniform(k1, HIDDEN1, n_features).T.astype(jnp.bfloat16)  # (F, 512)
    w2 = xavier_uniform(k2, HIDDEN2, HIDDEN1).T.astype(jnp.bfloat16)     # (512, 32)
    w3 = xavier_uniform(k3, 1, HIDDEN2).T                                # (32, 1)
    b1 = jnp.zeros((1, HIDDEN1), jnp.float32)
    b2 = jnp.zeros((1, HIDDEN2), jnp.float32)
    b3 = jnp.zeros((1, 1), jnp.float32)
    return (w1, b1, w2, b2, w3, b3)


def reference_forward(x, params):
    """Pure-JAX reference with the same bf16 matmul casts as the kernel."""
    w1, b1, w2, b2, w3, b3 = params
    xb = x.astype(jnp.bfloat16)
    h1 = jnp.maximum(
        jnp.dot(xb, w1, preferred_element_type=jnp.float32) + b1, 0.0)
    h2 = jnp.maximum(
        jnp.dot(h1.astype(jnp.bfloat16), w2,
                preferred_element_type=jnp.float32) + b2, 0.0)
    logits = jnp.dot(h2, w3, preferred_element_type=jnp.float32) + b3
    p = jax.nn.sigmoid(logits)          # (B, T, 1)
    return jnp.mean(p, axis=1)          # (B, 1)


if __name__ == "__main__":
    key = jax.random.PRNGKey(0)
    k_x, k_p = jax.random.split(key)

    B, T, F = 4, 8, N_FEATURES
    x = jax.random.normal(k_x, (B, T, F), jnp.float32)
    params = init_params(k_p, F)

    out = jax.block_until_ready(model_v2_forward(x, params))

    assert out.shape == (B, 1), out.shape
    assert bool(jnp.all(jnp.isfinite(out)))

    ref = reference_forward(x, params)
    assert jnp.allclose(out, ref, rtol=1e-3, atol=1e-3), (out, ref)

    print("KERNEL_OK")
</pallas_src>

<mosaic_0001>
module attributes {stable_mosaic.version = 11 : i64} {
  func.func @mlp_kernel(%arg0: i32, %arg1: memref<32x32xf32, #tpu.memory_space<vmem>>, %arg2: memref<32x512xbf16, #tpu.memory_space<vmem>>, %arg3: memref<1x512xf32, #tpu.memory_space<vmem>>, %arg4: memref<512x32xbf16, #tpu.memory_space<vmem>>, %arg5: memref<1x32xf32, #tpu.memory_space<vmem>>, %arg6: memref<32x128xf32, #tpu.memory_space<vmem>>, %arg7: memref<1x1xf32, #tpu.memory_space<vmem>>, %arg8: memref<4x128xf32, #tpu.memory_space<vmem>>) attributes {dimension_semantics = [#tpu.dimension_semantics<parallel>], iteration_bounds = array<i64: 1>, scalar_prefetch = 0 : i64, scratch_operands = 0 : i64, tpu.core_type = #tpu.core_type<tc>, window_params = [{transform_indices = @transform_0, window_bounds = array<i64: 32, 32>}, {pipeline_mode = #tpu.pipeline_mode<synchronous>, transform_indices = @transform_1, window_bounds = array<i64: 32, 512>}, {pipeline_mode = #tpu.pipeline_mode<synchronous>, transform_indices = @transform_2, window_bounds = array<i64: 1, 512>}, {pipeline_mode = #tpu.pipeline_mode<synchronous>, transform_indices = @transform_3, window_bounds = array<i64: 512, 32>}, {pipeline_mode = #tpu.pipeline_mode<synchronous>, transform_indices = @transform_4, window_bounds = array<i64: 1, 32>}, {pipeline_mode = #tpu.pipeline_mode<synchronous>, transform_indices = @transform_5, window_bounds = array<i64: 32, 128>}, {pipeline_mode = #tpu.pipeline_mode<synchronous>, transform_indices = @transform_6, window_bounds = array<i64: 1, 1>}, {transform_indices = @transform_7, window_bounds = array<i64: 4, 128>}]} {
    %c0 = arith.constant 0 : index
    %c0_0 = arith.constant 0 : index
    %0 = vector.load %arg1[%c0, %c0_0] : memref<32x32xf32, #tpu.memory_space<vmem>>, vector<32x32xf32>
    %1 = arith.truncf %0 : vector<32x32xf32> to vector<32x32xbf16>
    %c0_1 = arith.constant 0 : index
    %c0_2 = arith.constant 0 : index
    %2 = vector.load %arg2[%c0_1, %c0_2] : memref<32x512xbf16, #tpu.memory_space<vmem>>, vector<32x512xbf16>
    %cst = arith.constant dense<0.000000e+00> : vector<32x512xf32>
    %3 = tpu.matmul %1, %2, %cst {dimension_numbers = #tpu.dot_dimension_numbers<[1], [0], [0], [1], [0, 0, 1, 1], [], []>} : vector<32x32xbf16>, vector<32x512xbf16>, vector<32x512xf32> -> vector<32x512xf32>
    %c0_3 = arith.constant 0 : index
    %c0_4 = arith.constant 0 : index
    %4 = vector.load %arg3[%c0_3, %c0_4] : memref<1x512xf32, #tpu.memory_space<vmem>>, vector<1x512xf32>
    %5 = vector.broadcast %4 : vector<1x512xf32> to vector<32x512xf32>
    %6 = arith.addf %3, %5 : vector<32x512xf32>
    %cst_5 = arith.constant 0.000000e+00 : f32
    %7 = vector.broadcast %cst_5 : f32 to vector<32x512xf32>
    %8 = arith.maximumf %6, %7 : vector<32x512xf32>
    %9 = arith.truncf %8 : vector<32x512xf32> to vector<32x512xbf16>
    %c0_6 = arith.constant 0 : index
    %c0_7 = arith.constant 0 : index
    %10 = vector.load %arg4[%c0_6, %c0_7] : memref<512x32xbf16, #tpu.memory_space<vmem>>, vector<512x32xbf16>
    %cst_8 = arith.constant dense<0.000000e+00> : vector<32x32xf32>
    %11 = tpu.matmul %9, %10, %cst_8 {dimension_numbers = #tpu.dot_dimension_numbers<[1], [0], [0], [1], [0, 0, 1, 1], [], []>} : vector<32x512xbf16>, vector<512x32xbf16>, vector<32x32xf32> -> vector<32x32xf32>
    %c0_9 = arith.constant 0 : index
    %c0_10 = arith.constant 0 : index
    %12 = vector.load %arg5[%c0_9, %c0_10] : memref<1x32xf32, #tpu.memory_space<vmem>>, vector<1x32xf32>
    %13 = vector.broadcast %12 : vector<1x32xf32> to vector<32x32xf32>
    %14 = arith.addf %11, %13 : vector<32x32xf32>
    %cst_11 = arith.constant 0.000000e+00 : f32
    %15 = vector.broadcast %cst_11 : f32 to vector<32x32xf32>
    %16 = arith.maximumf %14, %15 : vector<32x32xf32>
    %c0_12 = arith.constant 0 : index
    %c0_13 = arith.constant 0 : index
    %17 = vector.load %arg6[%c0_12, %c0_13] : memref<32x128xf32, #tpu.memory_space<vmem>>, vector<32x128xf32>
    %cst_14 = arith.constant dense<0.000000e+00> : vector<32x128xf32>
    %18 = tpu.matmul %16, %17, %cst_14 {dimension_numbers = #tpu.dot_dimension_numbers<[1], [0], [0], [1], [0, 0, 1, 1], [], []>} : vector<32x32xf32>, vector<32x128xf32>, vector<32x128xf32> -> vector<32x128xf32>
    %c0_15 = arith.constant 0 : index
    %c0_16 = arith.constant 0 : index
    %19 = vector.load %arg7[%c0_15, %c0_16] : memref<1x1xf32, #tpu.memory_space<vmem>>, vector<1x1xf32>
    %20 = vector.extract %19[0, 0] : f32 from vector<1x1xf32>
    %21 = vector.broadcast %20 : f32 to vector<32x128xf32>
    %22 = arith.addf %18, %21 : vector<32x128xf32>
    %23 = arith.negf %22 : vector<32x128xf32>
    %24 = math.exp %23 : vector<32x128xf32>
    %cst_17 = arith.constant 1.000000e+00 : f32
    %25 = vector.broadcast %cst_17 : f32 to vector<32x128xf32>
    %26 = arith.addf %25, %24 : vector<32x128xf32>
    %27 = arith.divf %25, %26 : vector<32x128xf32>
    %28 = vector.shape_cast %27 : vector<32x128xf32> to vector<4x8x128xf32>
    %cst_18 = arith.constant dense<0.000000e+00> : vector<4x128xf32>
    %29 = vector.multi_reduction <add>, %28, %cst_18 [1] : vector<4x8x128xf32> to vector<4x128xf32>
    %cst_19 = arith.constant 1.250000e-01 : f32
    %30 = vector.broadcast %cst_19 : f32 to vector<4x128xf32>
    %31 = arith.mulf %29, %30 : vector<4x128xf32>
    %c0_20 = arith.constant 0 : index
    %c0_21 = arith.constant 0 : index
    %32 = vector.load %arg8[%c0_20, %c0_21] : memref<4x128xf32, #tpu.memory_space<vmem>>, vector<4x128xf32>
    tpu.vector_store %arg8[%c0_20, %c0_21], %31 {strides = array<i32>} : memref<4x128xf32, #tpu.memory_space<vmem>>, vector<4x128xf32>,
    return
  }
  func.func @transform_0(%arg0: i32) -> (i32, i32) {
    %c0_i32 = arith.constant 0 : i32
    %c0_i32_0 = arith.constant 0 : i32
    return %arg0, %c0_i32 : i32, i32
  }
  func.func @transform_1(%arg0: i32) -> (i32, i32) {
    %c0_i32 = arith.constant 0 : i32
    %c0_i32_0 = arith.constant 0 : i32
    %c0_i32_1 = arith.constant 0 : i32
    return %c0_i32, %c0_i32_0 : i32, i32
  }
  func.func @transform_2(%arg0: i32) -> (i32, i32) {
    %c0_i32 = arith.constant 0 : i32
    %c0_i32_0 = arith.constant 0 : i32
    %c0_i32_1 = arith.constant 0 : i32
    return %c0_i32, %c0_i32_0 : i32, i32
  }
  func.func @transform_3(%arg0: i32) -> (i32, i32) {
    %c0_i32 = arith.constant 0 : i32
    %c0_i32_0 = arith.constant 0 : i32
    %c0_i32_1 = arith.constant 0 : i32
    return %c0_i32, %c0_i32_0 : i32, i32
  }
  func.func @transform_4(%arg0: i32) -> (i32, i32) {
    %c0_i32 = arith.constant 0 : i32
    %c0_i32_0 = arith.constant 0 : i32
    %c0_i32_1 = arith.constant 0 : i32
    return %c0_i32, %c0_i32_0 : i32, i32
  }
  func.func @transform_5(%arg0: i32) -> (i32, i32) {
    %c0_i32 = arith.constant 0 : i32
    %c0_i32_0 = arith.constant 0 : i32
    %c0_i32_1 = arith.constant 0 : i32
    return %c0_i32, %c0_i32_0 : i32, i32
  }
  func.func @transform_6(%arg0: i32) -> (i32, i32) {
    %c0_i32 = arith.constant 0 : i32
    %c0_i32_0 = arith.constant 0 : i32
    %c0_i32_1 = arith.constant 0 : i32
    return %c0_i32, %c0_i32_0 : i32, i32
  }
  func.func @transform_7(%arg0: i32) -> (i32, i32) {
    %c0_i32 = arith.constant 0 : i32
    %c0_i32_0 = arith.constant 0 : i32
    return %arg0, %c0_i32 : i32, i32
  }
}

</mosaic_0001>

<bundles_post_ra>
// kernel: model_v2_forward.1
= control target key start
LH: loop header
LB: loop body
LE: loop exit
PB: predicated region body
PF: predicated region fallthrough
CT: control target
= control target key end

     0   :  { %v981_v1 = vmov 0   ;;  %vm105_vm0 = vcmask 261120   ;;  %v45_v47 = vlaneseq  ;;  %vm767_vm1 = vcmask 1041409   ;;  %s1186_s1 = inlined_call_operand.vmem [shape: bf16[32,512], index: 1, kind: input, shape index: {}]   ;;  %s1187_s0 = inlined_call_operand.vmem [shape: f32[32,32], index: 0, kind: input, shape index: {}]   ;;  %s1188_s3 = inlined_call_operand.vmem [shape: bf16[512,32], index: 3, kind: input, shape index: {}]   ;;  %s1189_s2 = inlined_call_operand.vmem [shape: f32[1,512], index: 2, kind: input, shape index: {}]   ;;  %s1190_s5 = inlined_call_operand.vmem [shape: f32[32,128], index: 5, kind: input, shape index: {}]   ;;  %s1191_s6 = inlined_call_operand.<no memory space> [shape: f32[1,1], index: 6, kind: input, shape index: {}]   ;;  %s1192_s4 = inlined_call_operand.vmem [shape: f32[1,32], index: 4, kind: input, shape index: {}]   ;;  %s1193_s7 = inlined_call_operand.vmem [shape: f32[4,128], index: 7, kind: output, shape index: {}]  }
   0x1   :  { %v921_v0 = vld [vmem:[%s1186_s1 + $0x24] ss:$16 sps:$4 sm:$0xff]   ;;  %144 = vmatprep.mubr.bf16.mxu0 %v981_v1  ;;  %197 = vmatprep.mubr.bf16.mxu1 %v981_v1  ;;  %v923_v2 = vld [vmem:[%s1186_s1 + $0x2c] ss:$16 sps:$4 sm:$0xff]   ;;  %v925_v3 = vld [vmem:[%s1186_s1 + $0x20] ss:$16 sps:$4 sm:$0xff]  }
   0x2   :  { %124 = vmatprep.subr.bf16.mxu0 %v921_v0  ;;  %v926_v4 = vld [vmem:[%s1186_s1 + $0x28] ss:$16 sps:$4 sm:$0xff]   ;;  %177 = vmatprep.subr.bf16.mxu1 %v923_v2  ;;  %v927_v5 = vld [vmem:[%s1186_s1 + $0x4] ss:$16 sps:$4 sm:$0xff]   ;;  %v929_v6 = vld [vmem:[%s1186_s1 + $0xc] ss:$16 sps:$4 sm:$0xff]  }
   0x3   :  { %125 = vmatpush1.bf16.msra.mxu0 %v925_v3  ;;  %178 = vmatpush1.bf16.msra.mxu1 %v926_v4  ;;  %v931_v7 = vld [vmem:[%s1186_s1] ss:$16 sps:$4 sm:$0xff]   ;;  %v932_v8 = vld [vmem:[%s1186_s1 + $0x8] ss:$16 sps:$4 sm:$0xff]   ;;  %v46_v48 = vshrl.u32 %v45_v47, 7  ;;  %vm769_vm2 = vcmask 1042434  }
   0x4   :  { %126 = vmatprep.subr.bf16.mxu0 %v927_v5  ;;  %v29_v9 = vld [vmem:[%s1187_s0] sm:$0xff]  ;;  %v30_v10 = vld [vmem:[%s1187_s0 + $0x8] sm:$0xff]  ;;  %179 = vmatprep.subr.bf16.mxu1 %v929_v6  ;;  %v933_v12 = vld [vmem:[%s1188_s3 + $0x78] sm:$0xff]   ;;  %vm771_vm3 = vcmask 1043459  }
   0x5   :  { %v33_v11 = vpack.c.bf16 %v30_v10, %v29_v9  ;;  %v934_v13 = vld [vmem:[%s1188_s3 + $0xf8] sm:$0xff]   ;;  %v31_v15 = vld [vmem:[%s1187_s0 + $0x10] sm:$0xff]  ;;  %v941_v23 = vld [vmem:[%s1188_s3 + $0x68] sm:$0xff]   ;;  %v51_v49 = vsub.s32 1, %v46_v48  ;;  %v59_v50 = vsub.s32 3, %v46_v48  ;;  %v47_v51 = vsub.s32 0, %v46_v48 }
   0x6   :  { %v935_v14 = vld [vmem:[%s1188_s3 + $0x38] sm:$0xff]   ;;  %v937_v18 = vld [vmem:[%s1188_s3 + $0x70] sm:$0xff]   ;;  %v942_v24 = vld [vmem:[%s1188_s3 + $0xe8] sm:$0xff]   ;;  %v55_v52 = vsub.s32 2, %v46_v48 }
   0x7   :  { %127 = vmatpush1.bf16.msra.mxu0 %v931_v7  ;;  %180 = vmatpush1.bf16.msra.mxu1 %v932_v8  ;;  %v32_v16 = vld [vmem:[%s1187_s0 + $0x18] sm:$0xff]  ;;  %v938_v19 = vld [vmem:[%s1188_s3 + $0xf0] sm:$0xff]   ;;  %v943_v25 = vld [vmem:[%s1188_s3 + $0x28] sm:$0xff]  }
   0x8   :  { %832 = vmatprep.subr.bf16.mxu0 %v933_v12  ;;  %860 = vmatprep.subr.bf16.mxu1 %v934_v13  ;;  %v936_v17 = vld [vmem:[%s1188_s3 + $0xb8] sm:$0xff]   ;;  %v939_v20 = vld [vmem:[%s1188_s3 + $0x30] sm:$0xff]   ;;  %v34_v22 = vpack.c.bf16 %v32_v16, %v31_v15  ;;  %v944_v26 = vld [vmem:[%s1188_s3 + $0xa8] sm:$0xff]  }
   0x9   :  { %v940_v21 = vld [vmem:[%s1188_s3 + $0xb0] sm:$0xff]   ;;  %v945_v27 = vld [vmem:[%s1188_s3 + $0x60] sm:$0xff]   ;;  %v949_v31 = vld [vmem:[%s1188_s3 + $0x58] sm:$0xff]  }
   0xa   :  { %787 = vmatmul.mubr.msk.bf16.vlgmr.msra.gmra.mxu0 %vm105_vm0, %v33_v11  ;;  %789 = vmatmul.mubr.msk.bf16.vlgmr.msra.gmra.mxu1 %vm105_vm0, %v33_v11  ;;  %v946_v28 = vld [vmem:[%s1188_s3 + $0xe0] sm:$0xff]   ;;  %v950_v32 = vld [vmem:[%s1188_s3 + $0xd8] sm:$0xff]   ;;  %v953_v35 = vld [vmem:[%s1188_s3 + $0x50] sm:$0xff]  }
   0xb   :  { %154 = vmatprep.mubr.bf16.mxu0 %v981_v1  ;;  %207 = vmatprep.mubr.bf16.mxu1 %v981_v1  ;;  %v947_v29 = vld [vmem:[%s1188_s3 + $0x20] sm:$0xff]   ;;  %v951_v33 = vld [vmem:[%s1188_s3 + $0x18] sm:$0xff]   ;;  %v954_v36 = vld [vmem:[%s1188_s3 + $0xd0] sm:$0xff]  }
   0xc   :  { %833 = vmatpush3.bf16.msra.mxu0 %v935_v14  ;;  %861 = vmatpush3.bf16.msra.mxu1 %v936_v17  ;;  %v948_v30 = vld [vmem:[%s1188_s3 + $0xa0] sm:$0xff]   ;;  %v952_v34 = vld [vmem:[%s1188_s3 + $0x98] sm:$0xff]   ;;  %v955_v37 = vld [vmem:[%s1188_s3 + $0x10] sm:$0xff]  }
   0xd   :  { %834 = vmatprep.subr.bf16.mxu0 %v937_v18  ;;  %862 = vmatprep.subr.bf16.mxu1 %v938_v19  ;;  %v956_v38 = vld [vmem:[%s1188_s3 + $0x90] sm:$0xff]   ;;  %v957_v39 = vld [vmem:[%s1188_s3 + $0x48] sm:$0xff]   ;;  %v961_v43 = vld [vmem:[%s1188_s3 + $0x40] sm:$0xff]  }
   0xe   :  { %v958_v40 = vld [vmem:[%s1188_s3 + $0xc8] sm:$0xff]   ;;  %v962_v44 = vld [vmem:[%s1188_s3 + $0xc0] sm:$0xff]  }
   0xf   :  { %v959_v41 = vld [vmem:[%s1188_s3 + $0x8] sm:$0xff]   ;;  %v963_v45 = vld [vmem:[%s1188_s3] sm:$0xff]  }
  0x10   :  { %835 = vmatpush3.bf16.msra.mxu0 %v939_v20  ;;  %863 = vmatpush3.bf16.msra.mxu1 %v940_v21  ;;  %v960_v42 = vld [vmem:[%s1188_s3 + $0x88] sm:$0xff]   ;;  %v964_v46 = vld [vmem:[%s1188_s3 + $0x80] sm:$0xff]  }
  0x11   :  { %836 = vmatprep.subr.bf16.mxu0 %v941_v23  ;;  %864 = vmatprep.subr.bf16.mxu1 %v942_v24  ;;  %v43_v53 = vld [vmem:[%s1189_s2] sm:$0xf] }
  0x12   :  { %788 = vmatmul.mubr.msk.bf16.gmra.mxu0 %vm105_vm0, %v34_v22  ;;  %790 = vmatmul.mubr.msk.bf16.gmra.mxu1 %vm105_vm0, %v34_v22  ;;  %v52_v56 = vrot.slane %v43_v53, %v51_v49  ;;  %v60_v57 = vrot.slane %v43_v53, %v59_v50  ;;  %v48_v58 = vrot.slane %v43_v53, %v47_v51  ;;  %v610_v50 = vld [vmem:[%s1190_s5 + $0x18] sm:$0xff]  ;;  %v609_v51 = vld [vmem:[%s1190_s5 + $0x10] sm:$0xff] }
  0x13   :  { %v56_v59 = vrot.slane %v43_v53, %v55_v52  ;;  %v608_v52 = vld [vmem:[%s1190_s5 + $0x8] sm:$0xff]  ;;  %v607_v53 = vld [vmem:[%s1190_s5] sm:$0xff] }
  0x14   :  { %837 = vmatpush3.bf16.msra.mxu0 %v943_v25  ;;  %865 = vmatpush3.bf16.msra.mxu1 %v944_v26 }
  0x15   :  { %838 = vmatprep.subr.bf16.mxu0 %v945_v27  ;;  %866 = vmatprep.subr.bf16.mxu1 %v946_v28 }
  0x18   :  { %839 = vmatpush3.bf16.msra.mxu0 %v947_v29  ;;  %867 = vmatpush3.bf16.msra.mxu1 %v948_v30 }
  0x19   :  { %840 = vmatprep.subr.bf16.mxu0 %v949_v31  ;;  %868 = vmatprep.subr.bf16.mxu1 %v950_v32 }
  0x1c   :  { %841 = vmatpush3.bf16.msra.mxu0 %v951_v33  ;;  %869 = vmatpush3.bf16.msra.mxu1 %v952_v34 }
  0x1d   :  { %842 = vmatprep.subr.bf16.mxu0 %v953_v35  ;;  %870 = vmatprep.subr.bf16.mxu1 %v954_v36 }
  0x20   :  { %843 = vmatpush3.bf16.msra.mxu0 %v955_v37  ;;  %871 = vmatpush3.bf16.msra.mxu1 %v956_v38 }
  0x21   :  { %844 = vmatprep.subr.bf16.mxu0 %v957_v39  ;;  %872 = vmatprep.subr.bf16.mxu1 %v958_v40 }
  0x24   :  { %845 = vmatpush3.bf16.msra.mxu0 %v959_v41  ;;  %873 = vmatpush3.bf16.msra.mxu1 %v960_v42 }
  0x25   :  { %846 = vmatprep.subr.bf16.mxu0 %v961_v43  ;;  %874 = vmatprep.subr.bf16.mxu1 %v962_v44 }
  0x28   :  { %847 = vmatpush3.bf16.msra.mxu0 %v963_v45  ;;  %875 = vmatpush3.bf16.msra.mxu1 %v964_v46 }
  0x29   :  { %896 = vmatprep.subr.mxu0 %v610_v50  ;;  %910 = vmatprep.subr.mxu1 %v610_v50 }
  0xca   :  { %v146_v54 = vpop.f32.mrf.mxu0  ;;  %v199_v55 = vpop.f32.mrf.mxu1 }
  0xcb   :  { %v147_v4 = vadd.f32 %v146_v54, %v48_v58  ;;  %v200_v5 = vadd.f32 %v199_v55, %v56_v59  ;;  %v12_v54 = vstv %s1191_s6 }
  0xcc   :  { %v148_v60 = vpop.f32.mrf.mxu0  ;;  %v201_v61 = vpop.f32.mrf.mxu1  ;;  %13 = vst [vmem:[#allocation2] sm:$0x1] %v12_v54 }
  0xcd   :  { %v149_v0 = vadd.f32 %v148_v60, %v52_v56  ;;  %v202_v1 = vadd.f32 %v201_v61, %v60_v57  ;;  %v218_v18 = vmax.f32 %v147_v4, 0.0  ;;  %v220_v19 = vmax.f32 %v200_v5, 0.0 }
  0xce   :  { %v150_v62 = vpop.f32.mrf.mxu0  ;;  %v203_v63 = vpop.f32.mrf.mxu1 }
  0xcf   :  { %v151_v2 = vadd.f32 %v150_v62, %v48_v58  ;;  %v204_v3 = vadd.f32 %v203_v63, %v56_v59  ;;  %v219_v14 = vmax.f32 %v149_v0, 0.0  ;;  %v221_v15 = vmax.f32 %v202_v1, 0.0 }
  0xd0   :  { %v152_v6 = vpop.f32.mrf.mxu0  ;;  %v205_v7 = vpop.f32.mrf.mxu1 }
  0xd1   :  { %v153_v8 = vadd.f32 %v152_v6, %v52_v56  ;;  %v206_v9 = vadd.f32 %v205_v7, %v60_v57  ;;  %v222_v10 = vmax.f32 %v151_v2, 0.0  ;;  %v224_v11 = vmax.f32 %v204_v3, 0.0 }
  0xd2   :  { %v156_v12 = vpop.f32.mrf.mxu0  ;;  %v209_v13 = vpop.f32.mrf.mxu1 }
  0xd3   :  { %v223_v16 = vmax.f32 %v153_v8, 0.0  ;;  %v225_v17 = vmax.f32 %v206_v9, 0.0  ;;  %v234_v24 = vpack.c.bf16 %v222_v10, %v218_v18  ;;  %v236_v25 = vpack.c.bf16 %v224_v11, %v220_v19  ;;  %v611_v55 = vld [vmem:[#allocation2] sm:$0x1] }
  0xd4   :  { %v158_v20 = vpop.f32.mrf.mxu0  ;;  %v211_v21 = vpop.f32.mrf.mxu1  ;;  %v157_v32 = vadd.f32 %v156_v12, %v48_v58  ;;  %v210_v33 = vadd.f32 %v209_v13, %v56_v59  ;;  %918 = vpush %v611_v55 }
  0xd5   :  { %v235_v22 = vpack.c.bf16 %v223_v16, %v219_v14  ;;  %v237_v23 = vpack.c.bf16 %v225_v17, %v221_v15  ;;  %v159_v26 = vadd.f32 %v158_v20, %v52_v56  ;;  %v212_v29 = vadd.f32 %v211_v21, %v60_v57 }
  0xd6   :  { %v160_v27 = vpop.f32.mrf.mxu0  ;;  %v213_v28 = vpop.f32.mrf.mxu1  ;;  %v226_v44 = vmax.f32 %v157_v32, 0.0  ;;  %v228_v45 = vmax.f32 %v210_v33, 0.0 }
  0xd7   :  { %v161_v30 = vadd.f32 %v160_v27, %v48_v58  ;;  %v214_v31 = vadd.f32 %v213_v28, %v56_v59  ;;  %537 = vmatprep.mubr.bf16.mxu0 %v235_v22  ;;  %586 = vmatprep.mubr.bf16.mxu1 %v237_v23  ;;  %v227_v40 = vmax.f32 %v159_v26, 0.0  ;;  %v229_v41 = vmax.f32 %v212_v29, 0.0  ;;  %v791_v58 = vld [vmem:[%s1192_s4] ss:$0 sm:$0xff] }
  0xd8   :  { %v162_v34 = vpop.f32.mrf.mxu0  ;;  %v215_v35 = vpop.f32.mrf.mxu1  ;;  %538 = vmatmul.mubr.bf16.vlgmr.msra.gmra.mxu0 %v234_v24  ;;  %587 = vmatmul.mubr.bf16.vlgmr.msra.gmra.mxu1 %v236_v25 }
  0xd9   :  { %v163_v36 = vadd.f32 %v162_v34, %v52_v56  ;;  %v216_v37 = vadd.f32 %v215_v35, %v60_v57  ;;  %v230_v38 = vmax.f32 %v161_v30, 0.0  ;;  %v232_v39 = vmax.f32 %v214_v31, 0.0  ;;  %897 = vmatpush3.msra.mxu0 %v610_v50  ;;  %914 = vmatpush3.msra.mxu1 %v610_v50 }
  0xda   :  { %898 = vmatprep.subr.mxu0 %v609_v51  ;;  %911 = vmatprep.subr.mxu1 %v609_v51 }
  0xdb   :  { %v231_v42 = vmax.f32 %v163_v36, 0.0  ;;  %v233_v43 = vmax.f32 %v216_v37, 0.0  ;;  %v238_v48 = vpack.c.bf16 %v230_v38, %v226_v44  ;;  %v240_v49 = vpack.c.bf16 %v232_v39, %v228_v45  ;;  %899 = vmatpush3.msra.mxu0 %v609_v51  ;;  %915 = vmatpush3.msra.mxu1 %v609_v51 }
  0xdc   :  { %900 = vmatprep.subr.mxu0 %v608_v52  ;;  %912 = vmatprep.subr.mxu1 %v608_v52 }
  0xdd   :  { %v239_v46 = vpack.c.bf16 %v231_v42, %v227_v40  ;;  %v241_v47 = vpack.c.bf16 %v233_v43, %v229_v41  ;;  %901 = vmatpush3.msra.mxu0 %v608_v52  ;;  %916 = vmatpush3.msra.mxu1 %v608_v52 }
  0xde   :  { %902 = vmatprep.subr.mxu0 %v607_v53  ;;  %913 = vmatprep.subr.mxu1 %v607_v53 }
  0xdf   :  { %545 = vmatprep.mubr.bf16.mxu0 %v239_v46  ;;  %594 = vmatprep.mubr.bf16.mxu1 %v241_v47 }
  0xe0   :  { %546 = vmatmul.mubr.bf16.gmra.mxu0 %v238_v48  ;;  %595 = vmatmul.mubr.bf16.gmra.mxu1 %v240_v49 }
  0xe1   :  { %903 = vmatpush3.msra.mxu0 %v607_v53  ;;  %917 = vmatpush3.msra.mxu1 %v607_v53 }
 0x105   :  { %s919_s4 = spop %918 }
 0x106   :  { %v613_v29 = vstv %s919_s4 }
 0x198   :  { %v848_v56 = vpop.f32.mrf.mxu0  ;;  %v876_v57 = vpop.f32.mrf.mxu1 }
 0x19a   :  { %v849_v59 = vpop.f32.mrf.mxu0  ;;  %v877_v60 = vpop.f32.mrf.mxu1 }
 0x19b   :  { %v850_v61 = vadd.f32 %v849_v59, %v848_v56  ;;  %v878_v1 = vadd.f32 %v877_v60, %v876_v57 }
 0x19c   :  { %v851_v62 = vpop.f32.mrf.mxu0  ;;  %v879_v63 = vpop.f32.mrf.mxu1 }
 0x19d   :  { %v540_v0 = vadd.f32 %v850_v61, %v791_v58 }
 0x19e   :  { %v852_v2 = vpop.f32.mrf.mxu0  ;;  %v880_v3 = vpop.f32.mrf.mxu1 }
 0x19f   :  { %v589_v4 = vadd.f32 %v878_v1, %v540_v0  ;;  %v853_v5 = vadd.f32 %v852_v2, %v851_v62  ;;  %v881_v10 = vadd.f32 %v880_v3, %v879_v63 }
 0x1a0   :  { %v854_v6 = vpop.f32.mrf.mxu0  ;;  %v882_v7 = vpop.f32.mrf.mxu1 }
 0x1a1   :  { %v603_v8 = vmax.f32 %v589_v4, 0.0  ;;  %v543_v9 = vadd.f32 %v853_v5, %v791_v58 }
 0x1a2   :  { %v855_v11 = vpop.f32.mrf.mxu0  ;;  %v883_v12 = vpop.f32.mrf.mxu1 }
 0x1a3   :  { %v592_v13 = vadd.f32 %v881_v10, %v543_v9  ;;  %v856_v14 = vadd.f32 %v855_v11, %v854_v6  ;;  %904 = vmatprep.mubr.msk.f32.mxu0 %vm105_vm0, %v603_v8  ;;  %v884_v19 = vadd.f32 %v883_v12, %v882_v7 }
 0x1a4   :  { %v857_v15 = vpop.f32.mrf.mxu0  ;;  %v885_v16 = vpop.f32.mrf.mxu1 }
 0x1a5   :  { %v604_v17 = vmax.f32 %v592_v13, 0.0  ;;  %v548_v18 = vadd.f32 %v856_v14, %v791_v58 }
 0x1a6   :  { %v858_v20 = vpop.f32.mrf.mxu0  ;;  %v886_v21 = vpop.f32.mrf.mxu1 }
 0x1a7   :  { %v597_v22 = vadd.f32 %v884_v19, %v548_v18  ;;  %v859_v23 = vadd.f32 %v858_v20, %v857_v15  ;;  %905 = vmatmul.mubr.msk.f32.vlgmr.msra.gmra.mxu0 %vm105_vm0, %v604_v17  ;;  %v887_v26 = vadd.f32 %v886_v21, %v885_v16 }
 0x1a9   :  { %v605_v24 = vmax.f32 %v597_v22, 0.0  ;;  %v551_v25 = vadd.f32 %v859_v23, %v791_v58 }
 0x1ab   :  { %v600_v27 = vadd.f32 %v887_v26, %v551_v25  ;;  %907 = vmatprep.mubr.msk.f32.mxu1 %vm105_vm0, %v605_v24 }
 0x1ad   :  { %v606_v28 = vmax.f32 %v600_v27, 0.0 }
 0x1af   :  { %908 = vmatmul.mubr.msk.f32.vlgmr.msra.gmra.mxu1 %vm105_vm0, %v606_v28 }
 0x267   :  { %v906_v30 = vpop.f32.mrf.mxu0 }
 0x268   :  { %v698_v31 = vadd.f32 %v906_v30, %v613_v29 }
 0x269   :  { %v692_v32 = vpop.f32.mrf.mxu0 }
 0x26a   :  { %v829_v33 = vmul.f32 -1.442695, %v698_v31  ;;  %v693_v34 = vadd.f32 %v692_v32, %v613_v29 }
 0x26c   :  { %965 = vpow2.f32 %v829_v33  ;;  %v828_v35 = vmul.f32 -1.442695, %v693_v34 }
 0x26e   :  { %967 = vpow2.f32 %v828_v35 }
 0x26f   :  { %v909_v36 = vpop.f32.mrf.mxu1 }
 0x270   :  { %v708_v37 = vadd.f32 %v909_v36, %v613_v29 }
 0x271   :  { %v702_v38 = vpop.f32.mrf.mxu1 }
 0x272   :  { %v831_v39 = vmul.f32 -1.442695, %v708_v37  ;;  %v703_v40 = vadd.f32 %v702_v38, %v613_v29 }
 0x274   :  { %969 = vpow2.f32 %v831_v39  ;;  %v830_v41 = vmul.f32 -1.442695, %v703_v40 }
 0x276   :  { %971 = vpow2.f32 %v830_v41 }
 0x279   :  { %v966_v42 = vpop.eup %965 }
 0x27a   :  { %v724_v43 = vadd.f32 1.0, %v966_v42 }
 0x27b   :  { %v968_v44 = vpop.eup %967 }
 0x27c   :  { %973 = vrcp.f32 %v724_v43  ;;  %v723_v45 = vadd.f32 1.0, %v968_v44 }
 0x27e   :  { %975 = vrcp.f32 %v723_v45 }
 0x281   :  { %v970_v46 = vpop.eup %969 }
 0x282   :  { %v726_v47 = vadd.f32 1.0, %v970_v46 }
 0x283   :  { %v972_v48 = vpop.eup %971 }
 0x284   :  { %977 = vrcp.f32 %v726_v47  ;;  %v725_v49 = vadd.f32 1.0, %v972_v48 }
 0x286   :  { %979 = vrcp.f32 %v725_v49 }
 0x289   :  { %v974_v50 = vpop.eup %973 }
 0x28a   :  { %v741_v51 = vrot.slane %v974_v50, 4 }
 0x28b   :  { %v976_v52 = vpop.eup %975 }
 0x28c   :  { %v742_v53 = vadd.f32 %v974_v50, %v741_v51  ;;  %v735_v54 = vrot.slane %v976_v52, 4 }
 0x28e   :  { %v736_v55 = vadd.f32 %v976_v52, %v735_v54  ;;  %v743_v56 = vrot.slane %v742_v53, 2 }
 0x290   :  { %v737_v57 = vrot.slane %v736_v55, 2  ;;  %v744_v62 = vadd.f32 %v743_v56, %v742_v53 }
 0x291   :  { %v978_v58 = vpop.eup %977 }
 0x292   :  { %v738_v59 = vadd.f32 %v737_v57, %v736_v55  ;;  %v753_v60 = vrot.slane %v978_v58, 4  ;;  %v745_v4 = vrot.slane %v744_v62, 1 }
 0x293   :  { %v980_v61 = vpop.eup %979 }
 0x294   :  { %v754_v63 = vadd.f32 %v978_v58, %v753_v60  ;;  %v747_v0 = vrot.slane %v980_v61, 4  ;;  %v739_v1 = vrot.slane %v738_v59, 1  ;;  %v746_v10 = vadd.f32 %v745_v4, %v744_v62 }
 0x296   :  { %v755_v2 = vrot.slane %v754_v63, 2  ;;  %v748_v3 = vadd.f32 %v980_v61, %v747_v0  ;;  %v740_v7 = vadd.f32 %v739_v1, %v738_v59  ;;  %v760_v15 = vmul.f32 0.125, %v746_v10 }
 0x298   :  { %v756_v5 = vadd.f32 %v755_v2, %v754_v63  ;;  %v749_v6 = vrot.slane %v748_v3, 2  ;;  %v759_v12 = vmul.f32 0.125, %v740_v7 }
 0x29a   :  { %v757_v8 = vrot.slane %v756_v5, 1  ;;  %v750_v9 = vadd.f32 %v749_v6, %v748_v3  ;;  %v768_v17 = vsel %vm767_vm1, %v760_v15, %v759_v12 }
 0x29c   :  { %v751_v11 = vrot.slane %v750_v9, 1  ;;  %v758_v13 = vadd.f32 %v757_v8, %v756_v5 }
 0x29e   :  { %v752_v14 = vadd.f32 %v751_v11, %v750_v9  ;;  %v762_v18 = vmul.f32 0.125, %v758_v13 }
 0x2a0   :  { %v761_v16 = vmul.f32 0.125, %v752_v14 }
 0x2a2   :  { %v770_v19 = vsel %vm769_vm2, %v761_v16, %v768_v17 }
 0x2a3   :  { %v772_v20 = vsel %vm771_vm3, %v762_v18, %v770_v19 }
 0x2a4   :  { %774 = vst [vmem:[%s1193_s7] sm:$0xf] %v772_v20 }

</bundles_post_ra>
